<compile_context>
chip_gen: v6e
topology: v6e:2x2x1
jax: 0.10.0
libtpu: 0.0.40
codegen_flags: <defaults>
</compile_context>

<pallas_src>
import functools

import jax
import jax.numpy as jnp
from jax.experimental import pallas as pl
from jax.experimental.pallas import tpu as pltpu


_ROWS_PER_BLOCK = 8  # one full sublane group of output rows per grid step


def _gather_rows_kernel(idx_ref, lt_hbm, o_ref, buf, sem, *, rows_per_block):
    """out[base + j, :] = lt[idx[base + j], :] for j in [0, rows_per_block)."""
    base = pl.program_id(0) * rows_per_block

    # Issue all row DMAs first so they are in flight concurrently...
    @pl.loop(0, rows_per_block)
    def _issue(j):
        row = idx_ref[base + j]
        pltpu.make_async_copy(lt_hbm.at[row], buf.at[j], sem.at[j]).start()

    # ...then wait on each slot (descriptor only needs matching shapes).
    @pl.loop(0, rows_per_block)
    def _wait(j):
        pltpu.make_async_copy(lt_hbm.at[0], buf.at[j], sem.at[j]).wait()

    # Dense (rows_per_block, V) store; pipelined write-back to HBM by Pallas.
    o_ref[...] = buf[...]


def bigram_logits_from_indices(idx: jax.Array, lt: jax.Array) -> jax.Array:
    """Row gather: out[s, :] = lt[idx[s], :].

    idx: (S,) integer token indices, lt: (V, V) float -> (S, V) float.
    """
    (S,) = idx.shape
    V, V2 = lt.shape
    assert V == V2

    rpb = _ROWS_PER_BLOCK
    n_blocks = pl.cdiv(S, rpb)
    s_pad = n_blocks * rpb

    idx32 = idx.astype(jnp.int32)
    if s_pad != S:
        # Pad with index 0 (valid row); padded output rows are sliced off.
        idx32 = jnp.concatenate([idx32, jnp.zeros((s_pad - S,), jnp.int32)])

    kernel = functools.partial(_gather_rows_kernel, rows_per_block=rpb)

    out = pl.pallas_call(
        kernel,
        out_shape=jax.ShapeDtypeStruct((s_pad, V), lt.dtype),
        grid_spec=pltpu.PrefetchScalarGridSpec(
            num_scalar_prefetch=1,  # idx lands in SMEM before the grid runs
            grid=(n_blocks,),
            in_specs=[
                # Full logit table stays in HBM; rows are DMA'd on demand.
                pl.BlockSpec(memory_space=pl.ANY),
            ],
            out_specs=pl.BlockSpec((rpb, V), lambda i, idx_ref: (i, 0)),
            scratch_shapes=[
                pltpu.VMEM((rpb, V), lt.dtype),      # row landing buffer
                pltpu.SemaphoreType.DMA((rpb,)),     # one sem slot per row DMA
            ],
        ),
        compiler_params=pltpu.CompilerParams(
            dimension_semantics=("arbitrary",),
        ),
    )(idx32, lt)

    return out[:S]


def bigram_forward(x: jax.Array, lt: jax.Array) -> jax.Array:
    """PyTorch-equivalent forward: x (S, V) one-hot -> x @ lt, shape (S, V).

    Assumes each row of x is a valid one-hot vector (module contract), so
    x @ lt is exactly lt[argmax(x, -1)].
    """
    S, V = x.shape
    assert lt.shape == (V, V)
    idx = jnp.argmax(x, axis=-1).astype(jnp.int32)
    return bigram_logits_from_indices(idx, lt)


if __name__ == "__main__":
    key = jax.random.PRNGKey(0)
    k_lt, k_idx, k_idx2 = jax.random.split(key, 3)

    vocab_size = 32
    seq_len = 8

    # Deterministic parameter init, mirroring torch.randn(vocab, vocab).
    lt = jax.random.normal(k_lt, (vocab_size, vocab_size), dtype=jnp.float32)

    # One-hot encoded input sequence of shape (seq_len, vocab_size).
    idx = jax.random.randint(k_idx, (seq_len,), 0, vocab_size)
    x = jax.nn.one_hot(idx, vocab_size, dtype=jnp.float32)

    out = bigram_forward(x, lt)
    jax.block_until_ready(out)

    # Correctness check against plain-JAX reference (x @ lt).
    ref = x @ lt
    assert out.shape == (seq_len, vocab_size)
    assert jnp.allclose(out, ref, atol=1e-6, rtol=1e-6)

    # Also exercise the index-based entry point with a ragged (padded) length.
    seq_len2 = 13
    idx2 = jax.random.randint(k_idx2, (seq_len2,), 0, vocab_size)
    out2 = bigram_logits_from_indices(idx2.astype(jnp.int32), lt)
    jax.block_until_ready(out2)
    ref2 = jax.nn.one_hot(idx2, vocab_size, dtype=jnp.float32) @ lt
    assert out2.shape == (seq_len2, vocab_size)
    assert jnp.allclose(out2, ref2, atol=1e-6, rtol=1e-6)

    print("KERNEL_OK")
</pallas_src>

<mosaic_0001>
module attributes {stable_mosaic.version = 11 : i64} {
  func.func @_gather_rows_kernel(%arg0: i32, %arg1: memref<8xi32, #tpu.memory_space<smem>>, %arg2: memref<32x32xf32, #tpu.memory_space<any>>, %arg3: memref<8x32xf32, #tpu.memory_space<vmem>>, %arg4: memref<8x32xf32, #tpu.memory_space<vmem>>, %arg5: memref<8x!tpu.dma_semaphore, #tpu.memory_space<semaphore_mem>>) attributes {dimension_semantics = [#tpu.dimension_semantics<arbitrary>], iteration_bounds = array<i64: 1>, scalar_prefetch = 1 : i64, scratch_operands = 2 : i64, tpu.core_type = #tpu.core_type<tc>, window_params = [{}, {transform_indices = @transform_1, window_bounds = array<i64: 8, 32>}]} {
    %c8_i32 = arith.constant 8 : i32
    %0 = arith.muli %arg0, %c8_i32 : i32
    %c0_i32 = arith.constant 0 : i32
    %c8_i32_0 = arith.constant 8 : i32
    %1 = arith.addi %c0_i32, %c8_i32_0 : i32
    %c1_i32 = arith.constant 1 : i32
    scf.for %arg6 = %c0_i32 to %1 step %c1_i32  : i32 {
      %c1_i32_9 = arith.constant 1 : i32
      %5 = arith.muli %arg6, %c1_i32_9 : i32
      %c0_i32_10 = arith.constant 0 : i32
      %6 = arith.addi %c0_i32_10, %5 : i32
      %7 = arith.addi %0, %6 : i32
      %8 = arith.index_cast %7 : i32 to index
      %9 = memref.load %arg1[%8] : memref<8xi32, #tpu.memory_space<smem>>
      %c0_i32_11 = arith.constant 0 : i32
      %10 = tpu.memref_slice %arg2[%9, %c0_i32_11] : memref<32x32xf32, #tpu.memory_space<any>> -> memref<1x32xf32, #tpu.memory_space<any>>
      %11 = tpu.memref_squeeze %10 : memref<1x32xf32, #tpu.memory_space<any>> -> memref<32xf32, #tpu.memory_space<any>>
      %c0_i32_12 = arith.constant 0 : i32
      %12 = tpu.memref_slice %arg4[%6, %c0_i32_12] : memref<8x32xf32, #tpu.memory_space<vmem>> -> memref<1x32xf32, #tpu.memory_space<vmem>>
      %13 = tpu.memref_squeeze %12 : memref<1x32xf32, #tpu.memory_space<vmem>> -> memref<32xf32, #tpu.memory_space<vmem>>
      %14 = tpu.memref_slice %arg5[%6] : memref<8x!tpu.dma_semaphore, #tpu.memory_space<semaphore_mem>> -> memref<1x!tpu.dma_semaphore, #tpu.memory_space<semaphore_mem>>
      %15 = tpu.memref_squeeze %14 : memref<1x!tpu.dma_semaphore, #tpu.memory_space<semaphore_mem>> -> memref<!tpu.dma_semaphore, #tpu.memory_space<semaphore_mem>>
      tpu.enqueue_dma source(%11 : memref<32xf32, #tpu.memory_space<any>>) target(%13 : memref<32xf32, #tpu.memory_space<vmem>>) target_semaphore(%15 : memref<!tpu.dma_semaphore, #tpu.memory_space<semaphore_mem>>)
    }
    %c8_i32_1 = arith.constant 8 : i32
    %c0_i32_2 = arith.constant 0 : i32
    %c8_i32_3 = arith.constant 8 : i32
    %2 = arith.addi %c0_i32_2, %c8_i32_3 : i32
    %c1_i32_4 = arith.constant 1 : i32
    scf.for %arg6 = %c0_i32_2 to %2 step %c1_i32_4  : i32 {
      %c1_i32_9 = arith.constant 1 : i32
      %5 = arith.muli %arg6, %c1_i32_9 : i32
      %c0_i32_10 = arith.constant 0 : i32
      %6 = arith.addi %c0_i32_10, %5 : i32
      %c0_i32_11 = arith.constant 0 : i32
      %c0_i32_12 = arith.constant 0 : i32
      %7 = tpu.memref_slice %arg2[%c0_i32_11, %c0_i32_12] : memref<32x32xf32, #tpu.memory_space<any>> -> memref<1x32xf32, #tpu.memory_space<any>>
      %8 = tpu.memref_squeeze %7 : memref<1x32xf32, #tpu.memory_space<any>> -> memref<32xf32, #tpu.memory_space<any>>
      %c0_i32_13 = arith.constant 0 : i32
      %9 = tpu.memref_slice %arg4[%6, %c0_i32_13] : memref<8x32xf32, #tpu.memory_space<vmem>> -> memref<1x32xf32, #tpu.memory_space<vmem>>
      %10 = tpu.memref_squeeze %9 : memref<1x32xf32, #tpu.memory_space<vmem>> -> memref<32xf32, #tpu.memory_space<vmem>>
      %11 = tpu.memref_slice %arg5[%6] : memref<8x!tpu.dma_semaphore, #tpu.memory_space<semaphore_mem>> -> memref<1x!tpu.dma_semaphore, #tpu.memory_space<semaphore_mem>>
      %12 = tpu.memref_squeeze %11 : memref<1x!tpu.dma_semaphore, #tpu.memory_space<semaphore_mem>> -> memref<!tpu.dma_semaphore, #tpu.memory_space<semaphore_mem>>
      tpu.wait_dma2 semaphore(%12 : memref<!tpu.dma_semaphore, #tpu.memory_space<semaphore_mem>>) src(%8 : memref<32xf32, #tpu.memory_space<any>>) dst(%10 : memref<32xf32, #tpu.memory_space<vmem>>)
    }
    %c8_i32_5 = arith.constant 8 : i32
    %c0 = arith.constant 0 : index
    %c0_6 = arith.constant 0 : index
    %3 = vector.load %arg4[%c0, %c0_6] : memref<8x32xf32, #tpu.memory_space<vmem>>, vector<8x32xf32>
    %c0_7 = arith.constant 0 : index
    %c0_8 = arith.constant 0 : index
    %4 = vector.load %arg3[%c0_7, %c0_8] : memref<8x32xf32, #tpu.memory_space<vmem>>, vector<8x32xf32>
    tpu.vector_store %arg3[%c0_7, %c0_8], %3 {strides = array<i32>} : memref<8x32xf32, #tpu.memory_space<vmem>>, vector<8x32xf32>,
    return
  }
  func.func @transform_1(%arg0: i32, %arg1: memref<8xi32, #tpu.memory_space<smem>>) -> (i32, i32) {
    %c0_i32 = arith.constant 0 : i32
    %c0_i32_0 = arith.constant 0 : i32
    return %arg0, %c0_i32 : i32, i32
  }
}

</mosaic_0001>

<bundles_post_ra>
// kernel: tpu_custom_call.1
= control target key start
LH: loop header
LB: loop body
LE: loop exit
PB: predicated region body
PF: predicated region fallthrough
CT: control target
= control target key end

     0   :  { %s231_s9 = smov [#allocation5]   ;;  %s275_s0 = inlined_call_operand.hbm [shape: s32[8], index: 0, kind: input, shape index: {}]   ;;  %s276_s1 = inlined_call_operand.hbm [shape: f32[32,32], index: 1, kind: input, shape index: {}]   ;;  %s277_s2 = inlined_call_operand.hbm [shape: f32[8,32], index: 2, kind: output, shape index: {}]  }
   0x1   :  { %8 = dma.hbm_to_smem %s275_s0, 16, %s231_s9, [#allocation4] }
   0x2   :  { %217 = dma.done.wait [#allocation4], 16 }
   0x3   :  { %218 = vsyncadd [#allocation4], 4294967280 }
   0x4   :  { %10 = sfence }
   0x5   :  { %11 = vsyncpa [#allocation7], 0  ;;  %s252_s12 = smov 0  }
   0x6 LB: > { %s20_s13 = sld [smem:[#allocation5 + %s225_s12]]  ;;  %s23_s14 = scalar_lea.vmem [#allocation2], %s225_s12  ;;  %s225_s12 = sphi %s252_s12, %s18_s12  }
   0x7   : > { %s32_s15 = sshll.u32 %s23_s14, 4  ;;  %s24_s19 = scalar_lea.sflag [#allocation3], %s225_s12  ;;  %s33_s15 = int_to_ptr.vmem [resolvable:$true] %s32_s15 }
   0x8   : > { %s169_s23 = scalar_lea.hbm %s276_s1, 512 }
   0xc   : > { %s132_s16 = sshll.u32 %s20_s13, 4 }
   0xd   : > { %s22_s18 = scalar_lea.hbm %s276_s1, %s132_s16 }
   0xe   : > { %s167_s20 = scalar_lea.hbm %s22_s18, 16  ;;  %p170_p1 = scmp.lt.s32.totalorder %s22_s18, %s276_s1 }
   0xf   : > { %p168_p0 = scmp.ne.s32.totalorder %s22_s18, %s167_s20  ;;  %p171_p2 = scmp.lt.s32.totalorder %s169_s23, %s167_s20 }
  0x11   : > { %p172_p3 = por %p171_p2, %p170_p1 }
  0x13   : > { %p173_p4 = pnand %p172_p3, %p168_p0 }
  0x15   : > { %176 = shalt.err (!%p173_p4)  }
  0x16   : > { %s177_s26 = scalar_lea.vmem %s33_s15, 16  ;;  %s232_s27 = smov [#allocation2]  }
  0x17   : > { %p178_p5 = scmp.ne.s32.totalorder %s33_s15, %s177_s26  ;;  %s179_s28 = sshll.u32 %s232_s27, 4  ;;  %s180_s28 = int_to_ptr.vmem [resolvable:$false] %s179_s28 }
  0x18   : > { %s181_s29 = scalar_lea.vmem %s180_s28, 128  ;;  %p182_p6 = scmp.lt.s32.totalorder %s33_s15, %s180_s28 }
  0x19   : > { %p183_p7 = scmp.lt.s32.totalorder %s181_s29, %s177_s26 }
  0x1b   : > { %p184_p8 = por %p183_p7, %p182_p6 }
  0x1d   : > { %p185_p9 = pnand %p184_p8, %p178_p5 }
  0x1f   : > { %188 = shalt.err (!%p185_p9)  }
  0x20   : > { %35 = dma.hbm_to_vmem [thread:$0]  %s22_s18, 16, %s33_s15, %s24_s19 }
  0x21   : > { %s18_s12 = sadd.s32 1, %s225_s12  }
  0x22   : > { %p15_p10 = scmp.ge.s32.totalorder %s18_s12, 8  }
  0x23   :  { %s227_s30 = smov (%p15_p10), 0  }
  0x24   :  { %17 = sbr.rel (!%p15_p10) target bundleno = 6 (0x6), region = 49 }
  0x29 LB: > { %s42_s3 = scalar_lea.sflag [#allocation3], %s229_s30  ;;  %s229_s30 = sphi %s227_s30, %s41_s30  }
  0x2a   : > { %219 = dma.done.wait %s42_s3, 16 }
  0x2b   : > { %220 = vsyncadd %s42_s3, 4294967280  ;;  %s41_s30 = sadd.s32 1, %s229_s30  }
  0x2c   : > { %p38_p11 = scmp.ge.s32.totalorder %s41_s30, 8  }
  0x2d   :  { %v45_v0 = vld [vmem:[#allocation2] sm:$0xff] (%p38_p11)  ;;  %vm46_vm0 = vcmask (%p38_p11), 261120   ;;  %s233_s4 = smov (%p38_p11), [#allocation6]  }
  0x2e   :  { %40 = sbr.rel (!%p38_p11) target bundleno = 41 (0x29), region = 60  ;;  %47 = vst.msk [vmem:[#allocation6] sm:$0xff] (%p38_p11), %vm46_vm0, %v45_v0  ;;  %s54_s5 = sshll.u32 (%p38_p11), %s233_s4, 4  ;;  %s55_s5 = int_to_ptr.vmem [resolvable:$true] %s54_s5 }
  0x2f   :  { %s189_s6 = scalar_lea.vmem (%p38_p11), %s55_s5, 128  ;;  %p194_p13 = scmp.lt.s32.totalorder (%p38_p11), %s55_s5, %s55_s5 }
  0x30   :  { %p190_p12 = scmp.ne.s32.totalorder (%p38_p11), %s55_s5, %s189_s6  ;;  %p195_p0 = scmp.lt.s32.totalorder (%p38_p11), %s189_s6, %s189_s6 }
  0x32   :  { %p196_p1 = por (%p38_p11), %p195_p0, %p194_p13 }
  0x34   :  { %p197_p2 = pnand %p196_p1, %p190_p12 }
  0x36   :  { %200 = shalt.err (!%p197_p2)
}
  0x37   :  { %57 = dma.vmem_to_hbm [thread:$0]  %s55_s5, 128, %s277_s2, [#allocation7]  }
  0x38   :  { %221 = dma.done.wait [#allocation7], 128  }
  0x39   :  { %222 = vsyncadd [#allocation7], 4294967168 }
  0x3a   :  { %61 = vsyncpa [#allocation7], 1 }
  0x3b   :  { %62 = vsyncmov [#allocation3] }
  0x3e   :  { %s63_s8 = vpop.sfrf %62 }
  0x3f   :  { %p133_p3 = scmp.ne.s32.totalorder %s63_s8, 0 }
  0x41   :  { %67 = shalt.err (%p133_p3)  }
  0x42   :  { %69 = vsyncmov [#allocation3 + $0x1] }
  0x45   :  { %s70_s9 = vpop.sfrf %69 }
  0x46   :  { %p134_p4 = scmp.ne.s32.totalorder %s70_s9, 0 }
  0x48   :  { %74 = shalt.err (%p134_p4)  }
  0x49   :  { %76 = vsyncmov [#allocation3 + $0x2] }
  0x4c   :  { %s77_s10 = vpop.sfrf %76 }
  0x4d   :  { %p135_p5 = scmp.ne.s32.totalorder %s77_s10, 0 }
  0x4f   :  { %81 = shalt.err (%p135_p5)  }
  0x50   :  { %83 = vsyncmov [#allocation3 + $0x3] }
  0x53   :  { %s84_s11 = vpop.sfrf %83 }
  0x54   :  { %p136_p6 = scmp.ne.s32.totalorder %s84_s11, 0 }
  0x56   :  { %88 = shalt.err (%p136_p6)  }
  0x57   :  { %90 = vsyncmov [#allocation3 + $0x4] }
  0x5a   :  { %s91_s2 = vpop.sfrf %90 }
  0x5b   :  { %p137_p7 = scmp.ne.s32.totalorder %s91_s2, 0 }
  0x5d   :  { %95 = shalt.err (%p137_p7)  }
  0x5e   :  { %97 = vsyncmov [#allocation3 + $0x5] }
  0x61   :  { %s98_s12 = vpop.sfrf %97 }
  0x62   :  { %p138_p8 = scmp.ne.s32.totalorder %s98_s12, 0 }
  0x64   :  { %102 = shalt.err (%p138_p8)  }
  0x65   :  { %104 = vsyncmov [#allocation3 + $0x6] }
  0x68   :  { %s105_s13 = vpop.sfrf %104 }
  0x69   :  { %p139_p9 = scmp.ne.s32.totalorder %s105_s13, 0 }
  0x6b   :  { %109 = shalt.err (%p139_p9)  }
  0x6c   :  { %111 = vsyncmov [#allocation3 + $0x7] }
  0x6f   :  { %s112_s14 = vpop.sfrf %111 }
  0x70   :  { %p140_p10 = scmp.ne.s32.totalorder %s112_s14, 0 }
  0x72   :  { %116 = shalt.err (%p140_p10)  }

</bundles_post_ra>
